<compile_context>
chip_gen: v7x
topology: tpu7x:2x2x1
jax: 0.10.0
libtpu: 0.0.40
codegen_flags: <defaults>
</compile_context>

<pallas_src>
import jax
import jax.numpy as jnp
from jax.experimental import pallas as pl
from jax.experimental.pallas import tpu as pltpu

# ---------------- problem sizes (small, deterministic) ----------------
BQ = 8          # number of queries
BD = 8          # number of (positive) docs
BN = 8          # number of negative docs
NDN = BD + BN   # docs + negatives (quantized together)
NT = BQ + NDN   # total stacked rows
EMB = 32        # emb_size
M = 4           # subvector_num
DS = EMB // M   # subvector dim
BITS = 4
K = 2 ** BITS   # codewords per subvector
MK = M * K
TEMPERATURE = 1.0

VMEM = pltpu.MemorySpace.VMEM
SMEM = pltpu.MemorySpace.SMEM


def _dot_t(a, b):
    """a @ b.T on the MXU without materializing the transpose."""
    return jax.lax.dot_general(
        a, b, dimension_numbers=(((1,), (1,)), ((), ())),
        preferred_element_type=jnp.float32)


# ---------------- fused forward kernel ----------------
def _fused_kernel(x_ref, rot_ref, cbrows_ref, c2_ref, loss_ref):
    # x_ref     : (NT, EMB)  stacked [query; doc; neg] embeddings
    # rot_ref   : (EMB, EMB) OPQ rotation R (we need x @ R.T)
    # cbrows_ref: (MK, EMB)  block-diag codebook rows (row m*K+k = codeword (m,k))
    # c2_ref    : (1, MK)    precomputed ||codeword||^2 per column of cb_ip
    # loss_ref  : (2,) SMEM  -> [dense_loss, pq_loss]
    x = x_ref[...]

    # --- OPQ rotation: all three batches in one matmul, no transpose op ---
    r = _dot_t(x, rot_ref[...])                              # (NT, EMB)

    # --- ONE fused MXU call for origin/dense scores + codeword inner products ---
    # LHS rows: [xq (0..7), rq (8..15), rdn (16..31)]
    # RHS rows: [xdn (0..15), rdn (16..31), codebook rows (32..95)]
    lhs = jnp.concatenate([x[:BQ], r], axis=0)               # (BQ + NT, EMB) = (32, 32)
    rhs = jnp.concatenate([x[BQ:], r[BQ:], cbrows_ref[...]], axis=0)  # (96, 32)
    big = _dot_t(lhs, rhs)                                   # (32, 96)

    origin_score = big[:BQ, :NDN]                            # xq @ xdn.T
    dense_score = big[BQ:2 * BQ, NDN:2 * NDN]                # rq @ rdn.T
    ip_q = big[BQ:2 * BQ, 2 * NDN:]                          # rq  @ cb_ip  (BQ, MK)
    ip_dn = big[2 * BQ:, 2 * NDN:]                           # rdn @ cb_ip  (NDN, MK)

    # --- PQ hard assignment (block-diag form) ---
    # argmax of -(||v||^2 + ||c||^2 - 2 v.c) == argmax of (2 v.c - ||c||^2);
    # the per-row ||v||^2 term is constant and dropped.  c2 is precomputed.
    s = 2.0 * ip_dn - c2_ref[...]                            # (NDN, MK)

    # Per-block first-max argmax (keeps the reference's tie semantics) folded
    # into ONE full-width one-hot via a shared iota (no lane concatenation).
    iota = jax.lax.broadcasted_iota(jnp.int32, (NDN, MK), 1)
    hit = None
    for m in range(M):                                       # static loop, M = 4
        idx = jnp.argmax(s[:, m * K:(m + 1) * K], axis=-1)[:, None] + m * K
        h = iota == idx                                      # disjoint lane ranges
        hit = h if hit is None else jnp.logical_or(hit, h)
    onehot = hit.astype(jnp.float32)                         # (NDN, MK), one 1 per block

    # pq_score = rq @ quant.T = (rq @ cb_ip) @ onehot.T  (quant never materialized)
    pq_score = _dot_t(ip_q, onehot)                          # (BQ, NDN)

    # --- distill losses; teacher softmax once, both students in one slab ---
    inv_t = 1.0 / TEMPERATURE
    true_smax = jax.nn.softmax(origin_score * inv_t, axis=1)         # (BQ, NDN)
    student = jnp.concatenate([dense_score, pq_score], axis=0) * inv_t  # (2*BQ, NDN)
    preds = jax.nn.softmax(student, axis=1) + 1e-6
    tt = jnp.concatenate([true_smax, true_smax], axis=0)              # (2*BQ, NDN)
    row_ce = -jnp.sum(tt * jnp.log(preds), axis=1, keepdims=True)     # (2*BQ, 1)

    loss_ref[0] = jnp.mean(row_ce[:BQ, :])   # dense_loss
    loss_ref[1] = jnp.mean(row_ce[BQ:, :])   # pq_loss


# ---------------- wrapper ----------------
def _prep_codebook(codebook):
    """Block-diag codebook rows (MK, EMB) and squared codeword norms (1, MK),
    built with one fused broadcast (no per-block dynamic-update-slice chain)."""
    eye = jnp.eye(M, dtype=codebook.dtype)
    # cb_rows[m*K+k, m'*DS+d] = codebook[m, k, d] * eye[m, m']
    cb_rows = (codebook[:, :, None, :] * eye[:, None, :, None]).reshape(MK, EMB)
    c2 = jnp.sum(codebook * codebook, axis=-1).reshape(1, MK)
    return cb_rows, c2


@jax.jit
def learnable_vq_forward(origin_q_emb, origin_d_emb, origin_n_emb, rotate, codebook):
    """Mirrors LearnableVQ.forward with ivf=None, pq!=None, fix_emb='query_doc',
    dist_mode='ip', loss_method='distill', world_size=1, temperature=1.0."""
    x = jnp.concatenate([origin_q_emb, origin_d_emb, origin_n_emb], axis=0)
    cb_rows, c2 = _prep_codebook(codebook)

    losses = pl.pallas_call(
        _fused_kernel,
        out_shape=jax.ShapeDtypeStruct((2,), jnp.float32),
        in_specs=[pl.BlockSpec(memory_space=VMEM)] * 4,
        out_specs=pl.BlockSpec(memory_space=SMEM),
    )(x, rotate, cb_rows, c2)

    dense_loss = losses[0]
    # TODO(synk): IVFCPU.select_centers requires a faiss/SPANN index file; the ivf branch is None here.
    ivf_loss = 0.0
    pq_loss = losses[1]
    return dense_loss, ivf_loss, pq_loss


# ---------------- pure-JAX reference (for sanity check) ----------------
def _ref_forward(q, d, n, rotate, codebook):
    rq, rd, rn = q @ rotate.T, d @ rotate.T, n @ rotate.T

    def quantize(v):
        vs = v.reshape(v.shape[0], M, DS)
        proba = -jnp.sum((vs[:, :, None, :] - codebook[None]) ** 2, axis=-1)  # (N,M,K)
        idx = jnp.argmax(proba, axis=-1)
        onehot = jax.nn.one_hot(idx, K, dtype=v.dtype)
        return jnp.einsum('nmk,mkd->nmd', onehot, codebook).reshape(v.shape[0], -1)

    qd, qn = quantize(rd), quantize(rn)

    def score(a, b, c):
        return jnp.concatenate([a @ b.T, a @ c.T], axis=-1) / TEMPERATURE

    def distill(t, s):
        ts = jax.nn.softmax(t, axis=1)
        ss = jax.nn.softmax(s, axis=1) + 1e-6
        return jnp.mean(-jnp.sum(ts * jnp.log(ss), axis=1))

    o_s, d_s, p_s = score(q, d, n), score(rq, rd, rn), score(rq, qd, qn)
    return distill(o_s, d_s), 0.0, distill(o_s, p_s)


if __name__ == "__main__":
    key = jax.random.PRNGKey(0)
    kq, kd, kn, kr, kc = jax.random.split(key, 5)

    origin_q_emb = jax.random.normal(kq, (BQ, EMB), dtype=jnp.float32)
    origin_d_emb = jax.random.normal(kd, (BD, EMB), dtype=jnp.float32)
    origin_n_emb = jax.random.normal(kn, (BN, EMB), dtype=jnp.float32)

    # Deterministic OPQ rotation (orthogonal via QR) and PQ codebook.
    rotate, _ = jnp.linalg.qr(jax.random.normal(kr, (EMB, EMB), dtype=jnp.float32))
    rotate = rotate.astype(jnp.float32)
    codebook = jax.random.normal(kc, (M, K, DS), dtype=jnp.float32)

    dense_loss, ivf_loss, pq_loss = learnable_vq_forward(
        origin_q_emb, origin_d_emb, origin_n_emb, rotate, codebook)
    dense_loss = jax.block_until_ready(dense_loss)
    pq_loss = jax.block_until_ready(pq_loss)

    # sanity check against a pure-JAX reference
    r_dense, r_ivf, r_pq = _ref_forward(origin_q_emb, origin_d_emb, origin_n_emb,
                                        rotate, codebook)
    assert jnp.allclose(dense_loss, r_dense, rtol=1e-4, atol=1e-4), (dense_loss, r_dense)
    assert jnp.allclose(pq_loss, r_pq, rtol=1e-4, atol=1e-4), (pq_loss, r_pq)
    assert ivf_loss == 0.0

    print("KERNEL_OK")
</pallas_src>

<mosaic_0001>
module attributes {stable_mosaic.version = 11 : i64} {
  func.func @_fused_kernel(%arg0: memref<24x32xf32, #tpu.memory_space<vmem>>, %arg1: memref<32x32xf32, #tpu.memory_space<vmem>>, %arg2: memref<64x32xf32, #tpu.memory_space<vmem>>, %arg3: memref<1x64xf32, #tpu.memory_space<vmem>>, %arg4: memref<2xf32, #tpu.memory_space<smem>>) attributes {dimension_semantics = [], scalar_prefetch = 0 : i64, scratch_operands = 0 : i64, tpu.core_type = #tpu.core_type<tc>} {
    %c0 = arith.constant 0 : index
    %c0_0 = arith.constant 0 : index
    %0 = vector.load %arg0[%c0, %c0_0] : memref<24x32xf32, #tpu.memory_space<vmem>>, vector<24x32xf32>
    %c0_1 = arith.constant 0 : index
    %c0_2 = arith.constant 0 : index
    %1 = vector.load %arg1[%c0_1, %c0_2] : memref<32x32xf32, #tpu.memory_space<vmem>>, vector<32x32xf32>
    %cst = arith.constant dense<0.000000e+00> : vector<24x32xf32>
    %2 = tpu.matmul %0, %1, %cst {dimension_numbers = #tpu.dot_dimension_numbers<[1], [1], [0], [0], [0, 0, 1, 0], [], []>} : vector<24x32xf32>, vector<32x32xf32>, vector<24x32xf32> -> vector<24x32xf32>
    %3 = vector.extract_strided_slice %0 {offsets = [0, 0], sizes = [8, 32], strides = [1, 1]} : vector<24x32xf32> to vector<8x32xf32>
    %4 = tpu.concatenate %3, %2 in 0 : vector<8x32xf32>, vector<24x32xf32> -> vector<32x32xf32>
    %5 = vector.extract_strided_slice %0 {offsets = [8, 0], sizes = [16, 32], strides = [1, 1]} : vector<24x32xf32> to vector<16x32xf32>
    %6 = vector.extract_strided_slice %2 {offsets = [8, 0], sizes = [16, 32], strides = [1, 1]} : vector<24x32xf32> to vector<16x32xf32>
    %c0_3 = arith.constant 0 : index
    %c0_4 = arith.constant 0 : index
    %7 = vector.load %arg2[%c0_3, %c0_4] : memref<64x32xf32, #tpu.memory_space<vmem>>, vector<64x32xf32>
    %8 = tpu.concatenate %5, %6, %7 in 0 : vector<16x32xf32>, vector<16x32xf32>, vector<64x32xf32> -> vector<96x32xf32>
    %cst_5 = arith.constant dense<0.000000e+00> : vector<32x96xf32>
    %9 = tpu.matmul %4, %8, %cst_5 {dimension_numbers = #tpu.dot_dimension_numbers<[1], [1], [0], [0], [0, 0, 1, 0], [], []>} : vector<32x32xf32>, vector<96x32xf32>, vector<32x96xf32> -> vector<32x96xf32>
    %10 = vector.extract_strided_slice %9 {offsets = [0, 0], sizes = [8, 16], strides = [1, 1]} : vector<32x96xf32> to vector<8x16xf32>
    %11 = vector.extract_strided_slice %9 {offsets = [8, 16], sizes = [8, 16], strides = [1, 1]} : vector<32x96xf32> to vector<8x16xf32>
    %12 = vector.extract_strided_slice %9 {offsets = [8, 32], sizes = [8, 64], strides = [1, 1]} : vector<32x96xf32> to vector<8x64xf32>
    %13 = vector.extract_strided_slice %9 {offsets = [16, 32], sizes = [16, 64], strides = [1, 1]} : vector<32x96xf32> to vector<16x64xf32>
    %cst_6 = arith.constant 2.000000e+00 : f32
    %14 = vector.broadcast %cst_6 : f32 to vector<16x64xf32>
    %15 = arith.mulf %14, %13 : vector<16x64xf32>
    %c0_7 = arith.constant 0 : index
    %c0_8 = arith.constant 0 : index
    %16 = vector.load %arg3[%c0_7, %c0_8] : memref<1x64xf32, #tpu.memory_space<vmem>>, vector<1x64xf32>
    %17 = vector.broadcast %16 : vector<1x64xf32> to vector<16x64xf32>
    %18 = arith.subf %15, %17 : vector<16x64xf32>
    %19 = tpu.iota {dimensions = array<i32: 1>} : vector<16x64xi32>
    %20 = vector.extract_strided_slice %18 {offsets = [0, 0], sizes = [16, 16], strides = [1, 1]} : vector<16x64xf32> to vector<16x16xf32>
    %21 = tpu.reduce_index %20 {axis = 1 : i32, kind = #tpu.reduction_kind<arg_max>} : vector<16x16xf32> -> vector<16xi32>
    %22 = vector.shape_cast %21 : vector<16xi32> to vector<16x1xi32>
    %c0_i32 = arith.constant 0 : i32
    %23 = vector.broadcast %c0_i32 : i32 to vector<16x1xi32>
    %24 = arith.addi %22, %23 : vector<16x1xi32>
    %25 = vector.broadcast %24 : vector<16x1xi32> to vector<16x64xi32>
    %26 = arith.cmpi eq, %19, %25 : vector<16x64xi32>
    %27 = vector.extract_strided_slice %18 {offsets = [0, 16], sizes = [16, 16], strides = [1, 1]} : vector<16x64xf32> to vector<16x16xf32>
    %28 = tpu.reduce_index %27 {axis = 1 : i32, kind = #tpu.reduction_kind<arg_max>} : vector<16x16xf32> -> vector<16xi32>
    %29 = vector.shape_cast %28 : vector<16xi32> to vector<16x1xi32>
    %c16_i32 = arith.constant 16 : i32
    %30 = vector.broadcast %c16_i32 : i32 to vector<16x1xi32>
    %31 = arith.addi %29, %30 : vector<16x1xi32>
    %32 = vector.broadcast %31 : vector<16x1xi32> to vector<16x64xi32>
    %33 = arith.cmpi eq, %19, %32 : vector<16x64xi32>
    %34 = arith.ori %26, %33 : vector<16x64xi1>
    %35 = vector.extract_strided_slice %18 {offsets = [0, 32], sizes = [16, 16], strides = [1, 1]} : vector<16x64xf32> to vector<16x16xf32>
    %36 = tpu.reduce_index %35 {axis = 1 : i32, kind = #tpu.reduction_kind<arg_max>} : vector<16x16xf32> -> vector<16xi32>
    %37 = vector.shape_cast %36 : vector<16xi32> to vector<16x1xi32>
    %c32_i32 = arith.constant 32 : i32
    %38 = vector.broadcast %c32_i32 : i32 to vector<16x1xi32>
    %39 = arith.addi %37, %38 : vector<16x1xi32>
    %40 = vector.broadcast %39 : vector<16x1xi32> to vector<16x64xi32>
    %41 = arith.cmpi eq, %19, %40 : vector<16x64xi32>
    %42 = arith.ori %34, %41 : vector<16x64xi1>
    %43 = vector.extract_strided_slice %18 {offsets = [0, 48], sizes = [16, 16], strides = [1, 1]} : vector<16x64xf32> to vector<16x16xf32>
    %44 = tpu.reduce_index %43 {axis = 1 : i32, kind = #tpu.reduction_kind<arg_max>} : vector<16x16xf32> -> vector<16xi32>
    %45 = vector.shape_cast %44 : vector<16xi32> to vector<16x1xi32>
    %c48_i32 = arith.constant 48 : i32
    %46 = vector.broadcast %c48_i32 : i32 to vector<16x1xi32>
    %47 = arith.addi %45, %46 : vector<16x1xi32>
    %48 = vector.broadcast %47 : vector<16x1xi32> to vector<16x64xi32>
    %49 = arith.cmpi eq, %19, %48 : vector<16x64xi32>
    %50 = arith.ori %42, %49 : vector<16x64xi1>
    %51 = arith.extui %50 : vector<16x64xi1> to vector<16x64xi32>
    %52 = arith.sitofp %51 : vector<16x64xi32> to vector<16x64xf32>
    %cst_9 = arith.constant dense<0.000000e+00> : vector<8x16xf32>
    %53 = tpu.matmul %12, %52, %cst_9 {dimension_numbers = #tpu.dot_dimension_numbers<[1], [1], [0], [0], [0, 0, 1, 0], [], []>} : vector<8x64xf32>, vector<16x64xf32>, vector<8x16xf32> -> vector<8x16xf32>
    %cst_10 = arith.constant 1.000000e+00 : f32
    %54 = vector.broadcast %cst_10 : f32 to vector<8x16xf32>
    %55 = arith.mulf %10, %54 : vector<8x16xf32>
    %cst_11 = arith.constant dense<0xFF800000> : vector<8xf32>
    %56 = vector.multi_reduction <maximumf>, %55, %cst_11 [1] : vector<8x16xf32> to vector<8xf32>
    %cst_12 = arith.constant 0xFF800000 : f32
    %57 = vector.broadcast %cst_12 : f32 to vector<8xf32>
    %58 = arith.maximumf %57, %56 : vector<8xf32>
    %59 = vector.shape_cast %58 : vector<8xf32> to vector<8x1xf32>
    %60 = vector.broadcast %59 : vector<8x1xf32> to vector<8x16xf32>
    %61 = arith.subf %55, %60 : vector<8x16xf32>
    %62 = math.exp %61 : vector<8x16xf32>
    %cst_13 = arith.constant dense<0.000000e+00> : vector<8xf32>
    %63 = vector.multi_reduction <add>, %62, %cst_13 [1] : vector<8x16xf32> to vector<8xf32>
    %64 = vector.shape_cast %63 : vector<8xf32> to vector<8x1xf32>
    %65 = vector.broadcast %64 : vector<8x1xf32> to vector<8x16xf32>
    %66 = arith.divf %62, %65 : vector<8x16xf32>
    %67 = tpu.concatenate %11, %53 in 0 : vector<8x16xf32>, vector<8x16xf32> -> vector<16x16xf32>
    %cst_14 = arith.constant 1.000000e+00 : f32
    %68 = vector.broadcast %cst_14 : f32 to vector<16x16xf32>
    %69 = arith.mulf %67, %68 : vector<16x16xf32>
    %cst_15 = arith.constant dense<0xFF800000> : vector<16xf32>
    %70 = vector.multi_reduction <maximumf>, %69, %cst_15 [1] : vector<16x16xf32> to vector<16xf32>
    %cst_16 = arith.constant 0xFF800000 : f32
    %71 = vector.broadcast %cst_16 : f32 to vector<16xf32>
    %72 = arith.maximumf %71, %70 : vector<16xf32>
    %73 = vector.shape_cast %72 : vector<16xf32> to vector<16x1xf32>
    %74 = vector.broadcast %73 : vector<16x1xf32> to vector<16x16xf32>
    %75 = arith.subf %69, %74 : vector<16x16xf32>
    %76 = math.exp %75 : vector<16x16xf32>
    %cst_17 = arith.constant dense<0.000000e+00> : vector<16xf32>
    %77 = vector.multi_reduction <add>, %76, %cst_17 [1] : vector<16x16xf32> to vector<16xf32>
    %78 = vector.shape_cast %77 : vector<16xf32> to vector<16x1xf32>
    %79 = vector.broadcast %78 : vector<16x1xf32> to vector<16x16xf32>
    %80 = arith.divf %76, %79 : vector<16x16xf32>
    %cst_18 = arith.constant 9.99999997E-7 : f32
    %81 = vector.broadcast %cst_18 : f32 to vector<16x16xf32>
    %82 = arith.addf %80, %81 : vector<16x16xf32>
    %83 = tpu.concatenate %66, %66 in 0 : vector<8x16xf32>, vector<8x16xf32> -> vector<16x16xf32>
    %84 = math.log %82 : vector<16x16xf32>
    %85 = arith.mulf %83, %84 : vector<16x16xf32>
    %cst_19 = arith.constant dense<0.000000e+00> : vector<16xf32>
    %86 = vector.multi_reduction <add>, %85, %cst_19 [1] : vector<16x16xf32> to vector<16xf32>
    %87 = vector.shape_cast %86 : vector<16xf32> to vector<16x1xf32>
    %cst_20 = arith.constant 0.000000e+00 : f32
    %88 = vector.broadcast %cst_20 : f32 to vector<16x1xf32>
    %89 = arith.subf %88, %87 : vector<16x1xf32>
    %90 = vector.extract_strided_slice %89 {offsets = [0, 0], sizes = [8, 1], strides = [1, 1]} : vector<16x1xf32> to vector<8x1xf32>
    %91 = vector.shape_cast %90 : vector<8x1xf32> to vector<1x8x1xf32>
    %cst_21 = arith.constant dense<0.000000e+00> : vector<1xf32>
    %92 = vector.multi_reduction <add>, %91, %cst_21 [1, 2] : vector<1x8x1xf32> to vector<1xf32>
    %93 = vector.shape_cast %92 : vector<1xf32> to vector<1x1x1xf32>
    %94 = vector.extract %93[0, 0, 0] : f32 from vector<1x1x1xf32>
    %cst_22 = arith.constant 8.000000e+00 : f32
    %95 = arith.divf %94, %cst_22 : f32
    %c0_23 = arith.constant 0 : index
    %96 = memref.load %arg4[%c0_23] : memref<2xf32, #tpu.memory_space<smem>>
    memref.store %95, %arg4[%c0_23] : memref<2xf32, #tpu.memory_space<smem>>
    %97 = vector.extract_strided_slice %89 {offsets = [8, 0], sizes = [8, 1], strides = [1, 1]} : vector<16x1xf32> to vector<8x1xf32>
    %98 = vector.shape_cast %97 : vector<8x1xf32> to vector<1x8x1xf32>
    %cst_24 = arith.constant dense<0.000000e+00> : vector<1xf32>
    %99 = vector.multi_reduction <add>, %98, %cst_24 [1, 2] : vector<1x8x1xf32> to vector<1xf32>
    %100 = vector.shape_cast %99 : vector<1xf32> to vector<1x1x1xf32>
    %101 = vector.extract %100[0, 0, 0] : f32 from vector<1x1x1xf32>
    %cst_25 = arith.constant 8.000000e+00 : f32
    %102 = arith.divf %101, %cst_25 : f32
    %c1 = arith.constant 1 : index
    %103 = memref.load %arg4[%c1] : memref<2xf32, #tpu.memory_space<smem>>
    memref.store %102, %arg4[%c1] : memref<2xf32, #tpu.memory_space<smem>>
    return
  }
}

</mosaic_0001>

<bundles_post_ra>
// kernel: learnable_vq_forward.1
= control target key start
LH: loop header
LB: loop body
LE: loop exit
PB: predicated region body
PF: predicated region fallthrough
CT: control target
= control target key end

     0   :  { %vm25_vm0 = vcmask 261120   ;;  %v743_v2 = vmov 0.0|0.0   ;;  %vm744_vm2 = vmmov 0   ;;  %v745_v6 = vmov 0.0   ;;  %s911_s0 = inlined_call_operand.vmem [shape: f32[24,32], index: 0, kind: input, shape index: {}]   ;;  %s912_s1 = inlined_call_operand.vmem [shape: f32[32,32], index: 1, kind: input, shape index: {}]   ;;  %s913_s2 = inlined_call_operand.vmem [shape: f32[64,32], index: 2, kind: input, shape index: {}]   ;;  %s914_s3 = inlined_call_operand.vmem [shape: f32[1,64], index: 3, kind: input, shape index: {}]   ;;  %s915_s4 = inlined_call_operand.vmem [shape: f32[2], index: 4, kind: output, shape index: {}]  }
   0x1   :  { %v21_v0 = vld [vmem:[%s912_s1] sm:$0xff]  ;;  %v22_v1 = vld [vmem:[%s912_s1 + $0x8] sm:$0xff]  ;;  %650 = vmatprep.subr.bf16.mxu0 %v743_v2  ;;  %vm787_vm1 = vmpackc.low %vm25_vm0, %vm25_vm0  ;;  %604 = vmatprep.mubr.msk.f32.mxu0 %vm744_vm2, %v745_v6 }
   0x2   :  { %v651_v3 = vpack.c.bf16 %v22_v1, %v21_v0  ;;  %v18_v5 = vld [vmem:[%s911_s0] sm:$0xff] }
   0x3   :  { %637 = vmatprep.mubr.msk.f32.mxu1 %vm25_vm0, %v18_v5 }
   0x4   :  { %9 = vsyncpa [#allocation3], 0  ;;  %653 = vmatpush3.bf16.xpose.msk.msra.mxu0 %vm787_vm1, %v651_v3  ;;  %v23_v7 = vld [vmem:[%s912_s1 + $0x10] sm:$0xff]  ;;  %v24_v8 = vld [vmem:[%s912_s1 + $0x18] sm:$0xff]  ;;  %s746_s30 = smov 32   ;;  %s748_s19 = smov 80   ;;  %v266_v60 = vlaneseq }
   0x5   :  { %654 = vmatprep.subr.bf16.mxu0 %v743_v2  ;;  %v655_v9 = vpack.c.bf16 %v24_v8, %v23_v7  ;;  %v19_v10 = vld [vmem:[%s911_s0 + $0x8] sm:$0xff]  ;;  %v20_v11 = vld [vmem:[%s911_s0 + $0x10] sm:$0xff]  ;;  %v564_v13 = vld [vmem:[%s914_s3] ss:$0 sm:$0xff]  ;;  %s749_s20 = smov 96   ;;  %s750_s21 = smov 48  }
   0x6   :  { %v658_v12 = vpack.c.bf16 %v20_v11, %v19_v10  ;;  %261 = vrot.lane.b32.xlu0 %v564_v13, %s746_s30  ;;  %v127_v18 = vld [vmem:[%s913_s2] sm:$0xff]  ;;  %v128_v19 = vld [vmem:[%s913_s2 + $0x8] sm:$0xff]  ;;  %v129_v24 = vld [vmem:[%s913_s2 + $0x10] sm:$0xff]  ;;  %vm276_vm3 = vcmask 130048   ;;  %v267_v63 = vand.u32 127, %v266_v60  ;;  %s751_s22 = smov 16  }
   0x7   :  { %v670_v23 = vpack.c.bf16 %v128_v19, %v127_v18  ;;  %v130_v25 = vld [vmem:[%s913_s2 + $0x18] sm:$0xff]  ;;  %v131_v27 = vld [vmem:[%s913_s2 + $0x20] sm:$0xff]  ;;  %v132_v28 = vld [vmem:[%s913_s2 + $0x28] sm:$0xff]  ;;  %s752_s23 = smov 112   ;;  %s532_s27 = sshll.u32 %s915_s4, 4  ;;  %s533_s27 = int_to_ptr.vmem [resolvable:$true] %s532_s27 }
   0x8   :  { %660 = vmatprep.subr.msk.bf16.mxu1 %vm787_vm1, %v658_v12  ;;  %v676_v26 = vpack.c.bf16 %v130_v25, %v129_v24  ;;  %v682_v29 = vpack.c.bf16 %v132_v28, %v131_v27  ;;  %v133_v30 = vld [vmem:[%s913_s2 + $0x30] sm:$0xff]  ;;  %v134_v31 = vld [vmem:[%s913_s2 + $0x38] sm:$0xff]  ;;  %s747_s2 = smov 64   ;;  %s729_s30 = scalar_lea.vmem %s533_s27, 16 }
   0x9   :  { %663 = vmatpush3.bf16.xpose.msk.msra.mxu1 %vm787_vm1, %v658_v12  ;;  %v688_v32 = vpack.c.bf16 %v134_v31, %v133_v30  ;;  %p730_p0 = scmp.ne.s32.totalorder %s533_s27, %s729_s30  ;;  %p734_p1 = scmp.lt.s32.totalorder %s533_s27, %s533_s27 }
   0xa   :  { %p735_p2 = scmp.lt.s32.totalorder %s729_s30, %s729_s30 }
   0xc   :  { %657 = vmatpush3.bf16.xpose.msk.msra.mxu0 %vm787_vm1, %v655_v9  ;;  %p736_p3 = por %p735_p2, %p734_p1 }
   0xd   :  { %694 = vmatprep.subr.bf16.mxu0 %v743_v2 }
   0xe   :  { %p737_p4 = pnand %p736_p3, %p730_p0 }
  0x13   :  { %605 = vmatmul.mubr.msk.f32.vlgmr.msra.gmra.mrb[0].mxu0 %vm25_vm0, %v18_v5 }
  0x14   :  { %607 = vmatprep.mubr.msk.f32.mxu0 %vm744_vm2, %v745_v6 }
  0x17   :  { %608 = vmatmul.mubr.msk.f32.gmra.mrb[2].mxu0 %vm25_vm0, %v19_v10 }
  0x18   :  { %610 = vmatprep.mubr.msk.f32.mxu0 %vm744_vm2, %v745_v6 }
  0x1b   :  { %611 = vmatmul.mubr.msk.f32.gmra.mrb[4].mxu0 %vm25_vm0, %v20_v11 }
  0x1c   :  { %647 = vmatprep.mubr.msk.f32.mxu0 %vm744_vm2, %v745_v6 }
  0x78   :  { %v262_v36 = vpop.permute.xlu0 %261 }
  0xe6   :  { %v113_v14 = vpop.f32.mrb[0].mxu0 }
  0xe7   :  { %v606_v15 = vpop.f32.mrb[1].mxu0 }
  0xea   :  { %v118_v16 = vpop.f32.mrb[2].mxu0 }
  0xeb   :  { %v609_v17 = vpop.f32.mrb[3].mxu0 }
  0xee   :  { %v123_v20 = vpop.f32.mrb[4].mxu0 }
  0xef   :  { %v664_v21 = vpack.c.bf16 %v123_v20, %v118_v16  ;;  %v612_v22 = vpop.f32.mrb[5].mxu0 }
  0xf1   :  { %666 = vmatprep.subr.msk.bf16.mxu1 %vm787_vm1, %v664_v21 }
  0xf2   :  { %669 = vmatpush3.bf16.xpose.msk.msra.mxu1 %vm787_vm1, %v664_v21 }
  0xf3   :  { %672 = vmatprep.subr.msk.bf16.mxu1 %vm787_vm1, %v670_v23 }
  0xfa   :  { %675 = vmatpush3.bf16.xpose.msk.msra.mxu1 %vm787_vm1, %v670_v23 }
  0xfb   :  { %678 = vmatprep.subr.msk.bf16.mxu1 %vm787_vm1, %v676_v26 }
 0x102   :  { %681 = vmatpush3.bf16.xpose.msk.msra.mxu1 %vm787_vm1, %v676_v26 }
 0x103   :  { %684 = vmatprep.subr.msk.bf16.mxu1 %vm787_vm1, %v682_v29 }
 0x10a   :  { %687 = vmatpush3.bf16.xpose.msk.msra.mxu1 %vm787_vm1, %v682_v29 }
 0x10b   :  { %690 = vmatprep.subr.msk.bf16.mxu1 %vm787_vm1, %v688_v32 }
 0x112   :  { %693 = vmatpush3.bf16.xpose.msk.msra.mxu1 %vm787_vm1, %v688_v32 }
 0x119   :  { %638 = vmatmul.mubr.msk.f32.vlgmr.msra.gmra.mrb[0].mxu1 %vm25_vm0, %v113_v14 }
 0x11a   :  { %640 = vmatprep.mubr.msk.f32.mxu1 %vm25_vm0, %v118_v16 }
 0x11d   :  { %641 = vmatmul.mubr.msk.f32.gmra.mrb[2].mxu1 %vm25_vm0, %v123_v20  ;;  %vm346_vm0 = vcmask 523264  }
 0x1ec   :  { %v876_v33 = vpop.f32.mrb[0].mxu1 }
 0x1ed   :  { %v878_v34 = vpop.f32.mrb[1].mxu1 }
 0x1ee   :  { %v425_v28 = vsel %vm276_vm3, %v878_v34, -inf }
 0x1f0   :  { %v642_v35 = vpop.f32.mrb[2].mxu1 }
 0x1f1   :  { %v254_v37 = vmul.f32 2.0, %v642_v35  ;;  %v244_v38 = vpop.f32.mrb[3].mxu1 }
 0x1f2   :  { %v253_v39 = vmul.f32 2.0, %v244_v38 }
 0x1f3   :  { %v265_v40 = vsub.f32 %v254_v37, %v262_v36 }
 0x1f4   :  { %v264_v41 = vsub.f32 %v253_v39, %v262_v36 }
 0x1f5   :  { %305 = vrot.lane.b32.xlu0 %v265_v40, %s747_s2  ;;  %287 = vrot.lane.b32.xlu1 %v265_v40, %s748_s19 }
 0x1f9   :  { %272 = vrot.lane.b32.xlu0 %v265_v40, %s749_s20  ;;  %303 = vrot.lane.b32.xlu1 %v264_v41, %s747_s2 }
 0x1fd   :  { %270 = vrot.lane.b32.xlu1 %v264_v41, %s749_s20  ;;  %285 = vrot.lane.b32.xlu0 %v264_v41, %s748_s19 }
 0x201   :  { %321 = vrot.lane.b32.xlu1 %v264_v41, %s750_s21  ;;  %323 = vrot.lane.b32.xlu0 %v265_v40, %s750_s21 }
 0x267   :  { %v306_v42 = vpop.permute.xlu0 %305  ;;  %v288_v43 = vpop.permute.xlu1 %287 }
 0x268   :  { %v312_v44 = vsel %vm276_vm3, %v306_v42, -inf  ;;  %v294_v45 = vsel %vm276_vm3, %v288_v43, -inf }
 0x269   :  { %313 = vmax.index.xlane.f32.xlu1 %v312_v44  ;;  %295 = vmax.index.xlane.f32.xlu0 %v294_v45 }
 0x26b   :  { %v273_v46 = vpop.permute.xlu0 %272  ;;  %v304_v47 = vpop.permute.xlu1 %303 }
 0x26c   :  { %v280_v48 = vsel %vm276_vm3, %v273_v46, -inf  ;;  %v309_v49 = vsel %vm276_vm3, %v304_v47, -inf }
 0x26d   :  { %281 = vmax.index.xlane.f32.xlu1 %v280_v48  ;;  %310 = vmax.index.xlane.f32.xlu0 %v309_v49 }
 0x26f   :  { %v271_v50 = vpop.permute.xlu1 %270  ;;  %v286_v51 = vpop.permute.xlu0 %285 }
 0x270   :  { %v277_v52 = vsel %vm276_vm3, %v271_v50, -inf  ;;  %v291_v53 = vsel %vm276_vm3, %v286_v51, -inf }
 0x271   :  { %278 = vmax.index.xlane.f32.xlu0 %v277_v52  ;;  %292 = vmax.index.xlane.f32.xlu1 %v291_v53 }
 0x273   :  { %v322_v54 = vpop.permute.xlu1 %321  ;;  %v324_v55 = vpop.permute.xlu0 %323 }
 0x274   :  { %v327_v56 = vsel %vm276_vm3, %v322_v54, -inf  ;;  %v330_v57 = vsel %vm276_vm3, %v324_v55, -inf }
 0x275   :  { %328 = vmax.index.xlane.f32.xlu0 %v327_v56  ;;  %331 = vmax.index.xlane.f32.xlu1 %v330_v57 }
 0x28b   :  { %344 = vrot.lane.b32.xlu0 %v876_v33, %s749_s20 }
 0x2f6   :  { %v314_v58 = vpop.xlane.xlu1 %313  ;;  %v296_v59 = vpop.xlane.xlu0 %295 }
 0x2f7   :  { %v298_v0 = vadd.s32 16, %v296_v59  ;;  %v316_v3 = vadd.s32 32, %v314_v58 }
 0x2f9   :  { %vm300_vm5 = vcmp.eq.s32.totalorder %v267_v63, %v298_v0  ;;  %vm318_vm10 = vcmp.eq.s32.totalorder %v267_v63, %v316_v3 }
 0x2fa   :  { %v282_v61 = vpop.xlane.xlu1 %281  ;;  %v311_v62 = vpop.xlane.xlu0 %310 }
 0x2fb   :  { %vm284_vm4 = vcmp.eq.s32.totalorder %v267_v63, %v282_v61  ;;  %v315_v5 = vadd.s32 32, %v311_v62 }
 0x2fc   :  { %vm302_vm6 = vmor %vm284_vm4, %vm300_vm5  ;;  %vm440_vm5 = vcmask 261248  }
 0x2fd   :  { %vm320_vm11 = vmor %vm302_vm6, %vm318_vm10  ;;  %vm317_vm12 = vcmp.eq.s32.totalorder %v267_v63, %v315_v5  ;;  %v441_v17 = vsel %vm440_vm5, %v876_v33, -inf  ;;  %vm495_vm6 = vcmask 7168  }
 0x2fe   :  { %v293_v1 = vpop.xlane.xlu1 %292  ;;  %v279_v2 = vpop.xlane.xlu0 %278  ;;  %vm696_vm4 = vmpackc.low %vm346_vm0, %vm346_vm0 }
 0x2ff   :  { %v297_v4 = vadd.s32 16, %v293_v1  ;;  %vm283_vm8 = vcmp.eq.s32.totalorder %v267_v63, %v279_v2 }
 0x301   :  { %vm299_vm7 = vcmp.eq.s32.totalorder %v267_v63, %v297_v4 }
 0x302   :  { %vm301_vm9 = vmor %vm283_vm8, %vm299_vm7  ;;  %v332_v7 = vpop.xlane.xlu1 %331  ;;  %v329_v8 = vpop.xlane.xlu0 %328 }
 0x303   :  { %v334_v9 = vadd.s32 48, %v332_v7  ;;  %v333_v10 = vadd.s32 48, %v329_v8  ;;  %vm319_vm13 = vmor %vm301_vm9, %vm317_vm12 }
 0x305   :  { %vm336_vm14 = vcmp.eq.s32.totalorder %v267_v63, %v334_v9  ;;  %vm335_vm15 = vcmp.eq.s32.totalorder %v267_v63, %v333_v10 }
 0x306   :  { %vm338_vm1 = vmor %vm320_vm11, %vm336_vm14  ;;  %v345_v14 = vpop.permute.xlu0 %344 }
 0x307   :  { %v566_v11 = vsel %vm338_vm1, 1.0, %v745_v6  ;;  %vm337_vm2 = vmor %vm319_vm13, %vm335_vm15 }
 0x308   :  { %v565_v12 = vsel %vm337_vm2, 1.0, %v745_v6 }
 0x309   :  { %v695_v13 = vpack.c.bf16 %v566_v11, %v565_v12 }
 0x30b   :  { %697 = vmatpush3.bf16.xpose.msk.msra.mxu0 %vm696_vm4, %v695_v13 }
 0x312   :  { %648 = vmatmul.mubr.msk.f32.vlgmr.msra.gmra.mrb[6].mxu0 %vm346_vm0, %v345_v14 }
 0x3e5   :  { %v421_v15 = vpop.f32.mrb[6].mxu0 }
 0x3e6   :  { %437 = vrot.lane.b32.xlu1 %v421_v15, %s751_s22  ;;  %v649_v16 = vpop.f32.mrb[7].mxu0 }
 0x40a   :  { %442 = vmax.xlane.f32.xlu1 %v441_v17 }
 0x458   :  { %v438_v18 = vpop.permute.xlu1 %437 }
 0x459   :  { %v444_v19 = vsel %vm440_vm5, %v438_v18, -inf }
 0x45a   :  { %445 = vmax.xlane.f32.xlu0 %v444_v19 }
 0x497   :  { %v443_v20 = vpop.xlane.xlu1 %442 }
 0x498   :  { %v447_v21 = vsub.f32 %v876_v33, %v443_v20 }
 0x49a   :  { %v449_v6 = vmul.f32 1.442695, %v447_v21 }
 0x49c   :  { %713 = vpow2.f32 %v449_v6 }
 0x4a6   :  { %v714_v22 = vpop.eup %713 }
 0x4a7   :  { %455 = vrot.lane.b32.xlu0 %v714_v22, %s752_s23 }
 0x4e7   :  { %v446_v23 = vpop.xlane.xlu0 %445 }
 0x4e8   :  { %v448_v24 = vsub.f32 %v438_v18, %v446_v23 }
 0x4ea   :  { %v451_v25 = vmul.f32 1.442695, %v448_v24 }
 0x4ec   :  { %715 = vpow2.f32 %v451_v25 }
 0x4f6   :  { %v716_v26 = vpop.eup %715 }
 0x4f7   :  { %457 = vrot.lane.b32.xlu1 %v716_v26, %s752_s23 }
 0x519   :  { %v456_v27 = vpop.permute.xlu0 %455 }
 0x51a   :  { %v461_v29 = vsel %vm276_vm3, %v456_v27, 0.0 }
 0x51b   :  { %426 = vmax.xlane.f32.xlu1 %v425_v28  ;;  %462 = vadd.xlane.f32.xlu0 %v461_v29 }
 0x569   :  { %v458_v30 = vpop.permute.xlu1 %457 }
 0x56a   :  { %v464_v31 = vsel %vm276_vm3, %v458_v30, 0.0 }
 0x56b   :  { %465 = vadd.xlane.f32.xlu0 %v464_v31 }
 0x5a8   :  { %v463_v32 = vpop.xlane.xlu0 %462  ;;  %v427_v33 = vpop.xlane.xlu1 %426 }
 0x5a9   :  { %717 = vrcp.f32 %v463_v32  ;;  %v428_v35 = vsub.f32 %v878_v34, %v427_v33 }
 0x5ab   :  { %v429_v36 = vmul.f32 1.442695, %v428_v35 }
 0x5ad   :  { %719 = vpow2.f32 %v429_v36 }
 0x5b3   :  { %v718_v37 = vpop.eup %717 }
 0x5b4   :  { %v468_v38 = vmul.f32 %v718_v37, %v714_v22 }
 0x5b6   :  { %v471_v39 = vadd.f32 1e-06, %v468_v38 }
 0x5b7   :  { %v720_v40 = vpop.eup %719 }
 0x5b8   :  { %v431_v41 = vsel %vm276_vm3, %v720_v40, 0.0  ;;  %721 = vlog2.f32 %v471_v39 }
 0x5b9   :  { %432 = vadd.xlane.f32.xlu1 %v431_v41 }
 0x5c2   :  { %v722_v42 = vpop.eup %721 }
 0x5c3   :  { %v474_v43 = vmul.f32 0.6931472, %v722_v42 }
 0x5c5   :  { %479 = vrot.lane.b32.xlu0 %v474_v43, %s752_s23 }
 0x5f8   :  { %v466_v44 = vpop.xlane.xlu0 %465 }
 0x5f9   :  { %723 = vrcp.f32 %v466_v44 }
 0x603   :  { %v724_v45 = vpop.eup %723 }
 0x604   :  { %v470_v46 = vmul.f32 %v724_v45, %v716_v26 }
 0x606   :  { %v472_v47 = vadd.f32 1e-06, %v470_v46 }
 0x608   :  { %725 = vlog2.f32 %v472_v47 }
 0x612   :  { %v726_v34 = vpop.eup %725 }
 0x613   :  { %v476_v48 = vmul.f32 0.6931472, %v726_v34 }
 0x615   :  { %481 = vrot.lane.b32.xlu1 %v476_v48, %s752_s23 }
 0x637   :  { %v480_v52 = vpop.permute.xlu0 %479 }
 0x646   :  { %v433_v49 = vpop.xlane.xlu1 %432 }
 0x647   :  { %727 = vrcp.f32 %v433_v49 }
 0x651   :  { %v728_v50 = vpop.eup %727 }
 0x652   :  { %v435_v51 = vmul.f32 %v728_v50, %v720_v40 }
 0x654   :  { %v485_v53 = vmul.f32 %v480_v52, %v435_v51 }
 0x656   :  { %v487_v54 = vsel %vm276_vm3, %v485_v53, 0.0 }
 0x657   :  { %488 = vadd.xlane.f32.xlu1 %v487_v54 }
 0x687   :  { %v482_v55 = vpop.permute.xlu1 %481 }
 0x688   :  { %v486_v56 = vmul.f32 %v482_v55, %v435_v51 }
 0x68a   :  { %v490_v57 = vsel %vm276_vm3, %v486_v56, 0.0 }
 0x68b   :  { %491 = vadd.xlane.f32.xlu0 %v490_v57 }
 0x6e4   :  { %v489_v58 = vpop.xlane.xlu1 %488 }
 0x6e5   :  { %v493_v59 = vsub.f32 0.0, %v489_v58 }
 0x6e7   :  { %v496_v60 = vsel %vm495_vm6, %v493_v59, 0.0 }
 0x6e8   :  { %497 = vadd.xlane.f32.xlu0 %v496_v60 }
 0x718   :  { %v492_v61 = vpop.xlane.xlu0 %491 }
 0x719   :  { %v494_v62 = vsub.f32 0.0, %v492_v61 }
 0x71b   :  { %v511_v63 = vsel %vm495_vm6, %v494_v62, 0.0 }
 0x71c   :  { %512 = vadd.xlane.f32.xlu1 %v511_v63 }
 0x775   :  { %v498_v0 = vpop.xlane.xlu0 %497 }
 0x776   :  { %v499_v1 = vrot.slane %v498_v0, 4 }
 0x778   :  { %v500_v2 = vadd.f32 %v499_v1, %v498_v0 }
 0x77a   :  { %v501_v3 = vrot.slane %v500_v2, 2 }
 0x77c   :  { %v502_v4 = vadd.f32 %v501_v3, %v500_v2 }
 0x77e   :  { %v503_v5 = vrot.slane %v502_v4, 1 }
 0x780   :  { %v504_v7 = vadd.f32 %v503_v5, %v502_v4 }
 0x782   :  { %698 = vpush %v504_v7 }
 0x7a9   :  { %v513_v8 = vpop.xlane.xlu1 %512 }
 0x7aa   :  { %v514_v9 = vrot.slane %v513_v8, 4 }
 0x7ac   :  { %v515_v10 = vadd.f32 %v514_v9, %v513_v8 }
 0x7ae   :  { %v516_v11 = vrot.slane %v515_v10, 2 }
 0x7b0   :  { %v517_v12 = vadd.f32 %v516_v11, %v515_v10 }
 0x7b2   :  { %v518_v13 = vrot.slane %v517_v12, 1 }
 0x7b3   :  { %s699_s24 = spop %698 }
 0x7b4   :  { %s508_s25 = smul.f32 0.125, %s699_s24  ;;  %v519_v14 = vadd.f32 %v518_v13, %v517_v12 }
 0x7b6   :  { %510 = sst [smem:[#allocation2]] %s508_s25  ;;  %700 = vpush %v519_v14 }
 0x7e7   :  { %s701_s28 = spop %700 }
 0x7e8   :  { %s523_s29 = smul.f32 0.125, %s701_s28 }
 0x7ea   :  { %525 = sst [smem:[#allocation2 + $0x1]] %s523_s29 }
 0x7eb   :  { %740 = shalt.err (!%p737_p4)
}
 0x7ec   :  { %s753_s0 = smov [#allocation2]  }
 0x7ed   :  { %535 = dma.smem_to_vmem %s753_s0, 16, %s533_s27, [#allocation3]  }
 0x7ee   :  { %741 = dma.done.wait [#allocation3], 16  }
 0x7ef   :  { %742 = vsyncadd [#allocation3], 4294967280 }
 0x7f0   :  { %539 = sfence }
 0x7f1   :  { %540 = vsyncpa [#allocation3], 1 }

</bundles_post_ra>
